<compile_context>
chip_gen: v7x
topology: tpu7x:2x2x1
jax: 0.10.0
libtpu: 0.0.40
codegen_flags: <defaults>
</compile_context>

<pallas_src>
import functools

import jax
import jax.numpy as jnp
from jax.experimental import pallas as pl
from jax.experimental.pallas import tpu as pltpu


def _round_up(n, m):
    return ((n + m - 1) // m) * m


def basal_mlp_kernel(x_ref, w1_ref, b1_ref, w2_ref, b2_ref, out_ref):
    # Cast the x tile to the matmul dtype in-kernel (no-op for f32; for the
    # bf16 path this avoids a separate HBM-materialized bf16 copy of x).
    x = x_ref[...].astype(w1_ref.dtype)
    # Linear 1 (eval-mode BatchNorm already folded into W1/b1), f32 MXU acc.
    h = jnp.dot(x, w1_ref[...], preferred_element_type=jnp.float32)
    h = h + b1_ref[...]                        # bias (+ folded BN shift), f32
    # LeakyReLU (default negative_slope = 0.01), f32 elementwise (v5e-safe).
    h = jnp.where(h >= 0.0, h, 0.01 * h)
    # Dropout: identity in eval mode.
    # Linear 2: cast activations to the (possibly bf16) weight dtype so the
    # MXU sees matching operands; accumulate in f32; store unpadded lanes.
    out = jnp.dot(h.astype(w2_ref.dtype), w2_ref[...],
                  preferred_element_type=jnp.float32)
    out_ref[...] = (out + b2_ref[...]).astype(out_ref.dtype)


def prepare_params(params, use_bf16=False, eps=1e-5):
    """One-time parameter preparation (call once, reuse across forwards).

    Folds eval-mode BatchNorm into the first Linear and (optionally) casts the
    matmul weights to bf16.  Biases stay f32 so all in-kernel elementwise math
    is f32 (works on v5e, which lacks bf16 VPU/EUP).  The bf16 operand path is
    useful on all generations (biggest relative win on v5e's slower HBM).
    """
    w1, b1, gamma, beta, running_mean, running_var, w2, b2 = params
    # y = (x@W1 + b1 - mean) * gamma/sqrt(var+eps) + beta
    #   = x @ (W1 * s) + ((b1 - mean) * s + beta),   s = gamma/sqrt(var+eps)
    scale = gamma / jnp.sqrt(running_var + eps)            # [H]
    w1f = w1 * scale[None, :]                               # [D_in, H]
    b1f = (b1 - running_mean) * scale + beta                # [H]

    mm_dtype = jnp.bfloat16 if use_bf16 else w1.dtype
    H = w1.shape[1]
    L = w2.shape[1]
    return (
        w1f.astype(mm_dtype),                    # [D_in, H]  matmul operand
        b1f.reshape(1, H).astype(jnp.float32),   # [1, H]     f32 bias
        w2.astype(mm_dtype),                     # [H, L]     matmul operand
        b2.reshape(1, L).astype(jnp.float32),    # [1, L]     f32 bias
    )


@functools.partial(jax.jit, static_argnames=("block_b",))
def basal_mlp_forward(x, prepared, block_b=256):
    """Fused BasalMLP forward. `prepared` comes from prepare_params().

    Returns (intrinsic_mean, 0, 0), matching the PyTorch module.
    """
    w1, b1, w2, b2 = prepared
    B, D_in = x.shape
    H = w1.shape[1]
    L = w2.shape[1]

    # ---- Batch tiling ------------------------------------------------------
    # Multiple of 8 (sublane).  For B > 8 force an even, >= 2-step grid so the
    # "parallel" axis balances across the two v7x TensorCores (also fine on
    # single-TC v5e/v6e: it just amortizes per-step overhead over >= 2 steps).
    # On v6e with large B, sweeping block_b up to 512-1024 can help further.
    block_b = max(8, _round_up(int(block_b), 8))
    if B <= 8:
        block_b = _round_up(B, 8)
    else:
        steps = 2 * pl.cdiv(B, 2 * block_b)          # even step count
        block_b = _round_up(pl.cdiv(B, steps), 8)
    grid = (pl.cdiv(B, block_b),)

    # ---- VMEM budget (explicit, conservative; well under v7x's 64 MiB) -----
    x_bytes = jnp.dtype(x.dtype).itemsize
    w_bytes = jnp.dtype(w1.dtype).itemsize
    vmem_est = (
        2 * block_b * D_in * x_bytes              # x tile, double-buffered
        + 2 * block_b * L * x_bytes               # out tile, double-buffered
        + 2 * (D_in * H + H * L) * w_bytes        # resident weights (2x margin)
        + 2 * (H + L) * 4 * 2                     # biases
        + block_b * H * 4                         # [block_b, H] f32 intermediate
        + block_b * max(D_in, H) * 4              # slack for in-kernel casts
    )
    vmem_limit = int(min(max(2 * vmem_est, 16 << 20), 48 << 20))

    out = pl.pallas_call(
        basal_mlp_kernel,
        out_shape=jax.ShapeDtypeStruct((B, L), x.dtype),
        grid_spec=pltpu.PrefetchScalarGridSpec(
            num_scalar_prefetch=0,
            grid=grid,
            in_specs=[
                pl.BlockSpec((block_b, D_in), lambda i: (i, 0)),   # x tile
                pl.BlockSpec((D_in, H), lambda i: (0, 0)),         # W1' resident
                pl.BlockSpec((1, H), lambda i: (0, 0)),            # b1' (f32)
                pl.BlockSpec((H, L), lambda i: (0, 0)),            # W2  resident
                pl.BlockSpec((1, L), lambda i: (0, 0)),            # b2  (f32)
            ],
            out_specs=pl.BlockSpec((block_b, L), lambda i: (i, 0)),
        ),
        compiler_params=pltpu.CompilerParams(
            dimension_semantics=("parallel",),
            vmem_limit_bytes=vmem_limit),
    )(x, w1, b1, w2, b2)

    return out, 0, 0


def init_params(key, input_dim, hidden_dim, latent_dim, dtype=jnp.float32):
    """Deterministic PyTorch-style init (uniform +/- 1/sqrt(fan_in))."""
    k1, k2, k3, k4 = jax.random.split(key, 4)
    bound1 = 1.0 / jnp.sqrt(input_dim)
    w1 = jax.random.uniform(k1, (input_dim, hidden_dim), dtype,
                            minval=-bound1, maxval=bound1)
    b1 = jax.random.uniform(k2, (hidden_dim,), dtype,
                            minval=-bound1, maxval=bound1)
    # BatchNorm1d defaults: gamma=1, beta=0, running_mean=0, running_var=1
    gamma = jnp.ones((hidden_dim,), dtype)
    beta = jnp.zeros((hidden_dim,), dtype)
    running_mean = jnp.zeros((hidden_dim,), dtype)
    running_var = jnp.ones((hidden_dim,), dtype)
    bound2 = 1.0 / jnp.sqrt(hidden_dim)
    w2 = jax.random.uniform(k3, (hidden_dim, latent_dim), dtype,
                            minval=-bound2, maxval=bound2)
    b2 = jax.random.uniform(k4, (latent_dim,), dtype,
                            minval=-bound2, maxval=bound2)
    return (w1, b1, gamma, beta, running_mean, running_var, w2, b2)


def reference_forward(x, params):
    """Plain-JAX reference (eval-mode semantics)."""
    w1, b1, gamma, beta, running_mean, running_var, w2, b2 = params
    eps = 1e-5
    h = x @ w1 + b1
    h = (h - running_mean) / jnp.sqrt(running_var + eps) * gamma + beta
    h = jnp.where(h >= 0.0, h, 0.01 * h)
    return h @ w2 + b2


if __name__ == "__main__":
    # Shapes consistent with the module: input_dim=32, hidden_dim=128,
    # latent_dim=64.  Batch 512 with block_b=256 -> even 2-step grid
    # (exercises the pipeline and balances both v7x TensorCores).
    B, INPUT_DIM, HIDDEN_DIM, LATENT_DIM = 512, 32, 128, 64

    key = jax.random.PRNGKey(0)
    kx, kp = jax.random.split(key)
    x = jax.random.normal(kx, (B, INPUT_DIM), jnp.float32)
    params = init_params(kp, INPUT_DIM, HIDDEN_DIM, LATENT_DIM)

    ref = reference_forward(x, params)

    # f32 path: strict check.
    prepared_f32 = prepare_params(params, use_bf16=False)
    intrinsic_mean, z0, z1 = basal_mlp_forward(x, prepared_f32, block_b=256)
    intrinsic_mean = jax.block_until_ready(intrinsic_mean)
    assert intrinsic_mean.shape == (B, LATENT_DIM)
    assert z0 == 0 and z1 == 0
    assert jnp.allclose(intrinsic_mean, ref, atol=1e-4, rtol=1e-4)

    # bf16-operand path (all generations; biggest relative win on v5e):
    # weights prepared once in bf16, x stays f32 and is cast in-kernel.
    prepared_bf16 = prepare_params(params, use_bf16=True)
    out_bf16, _, _ = basal_mlp_forward(x, prepared_bf16, block_b=256)
    out_bf16 = jax.block_until_ready(out_bf16)
    assert out_bf16.shape == (B, LATENT_DIM)
    assert jnp.allclose(out_bf16, ref, atol=5e-2, rtol=5e-2)

    # Ragged / small-batch path (edge-block masking + B<=8 clamp).
    xs = x[:40]
    out_small, _, _ = basal_mlp_forward(xs, prepared_f32, block_b=256)
    out_small = jax.block_until_ready(out_small)
    assert out_small.shape == (40, LATENT_DIM)
    assert jnp.allclose(out_small, ref[:40], atol=1e-4, rtol=1e-4)

    print("KERNEL_OK")
</pallas_src>

<mosaic_0001>
module attributes {stable_mosaic.version = 11 : i64} {
  func.func @basal_mlp_kernel(%arg0: i32, %arg1: memref<256x32xf32, #tpu.memory_space<vmem>>, %arg2: memref<32x128xf32, #tpu.memory_space<vmem>>, %arg3: memref<1x128xf32, #tpu.memory_space<vmem>>, %arg4: memref<128x64xf32, #tpu.memory_space<vmem>>, %arg5: memref<1x64xf32, #tpu.memory_space<vmem>>, %arg6: memref<256x64xf32, #tpu.memory_space<vmem>>) attributes {dimension_semantics = [#tpu.dimension_semantics<parallel>], iteration_bounds = array<i64: 2>, scalar_prefetch = 0 : i64, scratch_operands = 0 : i64, tpu.core_type = #tpu.core_type<tc>, window_params = [{transform_indices = @transform_0, window_bounds = array<i64: 256, 32>}, {pipeline_mode = #tpu.pipeline_mode<synchronous>, transform_indices = @transform_1, window_bounds = array<i64: 32, 128>}, {pipeline_mode = #tpu.pipeline_mode<synchronous>, transform_indices = @transform_2, window_bounds = array<i64: 1, 128>}, {pipeline_mode = #tpu.pipeline_mode<synchronous>, transform_indices = @transform_3, window_bounds = array<i64: 128, 64>}, {pipeline_mode = #tpu.pipeline_mode<synchronous>, transform_indices = @transform_4, window_bounds = array<i64: 1, 64>}, {transform_indices = @transform_5, window_bounds = array<i64: 256, 64>}]} {
    %c0 = arith.constant 0 : index
    %c0_0 = arith.constant 0 : index
    %0 = vector.load %arg1[%c0, %c0_0] : memref<256x32xf32, #tpu.memory_space<vmem>>, vector<256x32xf32>
    %c0_1 = arith.constant 0 : index
    %c0_2 = arith.constant 0 : index
    %1 = vector.load %arg2[%c0_1, %c0_2] : memref<32x128xf32, #tpu.memory_space<vmem>>, vector<32x128xf32>
    %cst = arith.constant dense<0.000000e+00> : vector<256x128xf32>
    %2 = tpu.matmul %0, %1, %cst {dimension_numbers = #tpu.dot_dimension_numbers<[1], [0], [0], [1], [0, 0, 1, 1], [], []>} : vector<256x32xf32>, vector<32x128xf32>, vector<256x128xf32> -> vector<256x128xf32>
    %c0_3 = arith.constant 0 : index
    %c0_4 = arith.constant 0 : index
    %3 = vector.load %arg3[%c0_3, %c0_4] : memref<1x128xf32, #tpu.memory_space<vmem>>, vector<1x128xf32>
    %4 = vector.broadcast %3 : vector<1x128xf32> to vector<256x128xf32>
    %5 = arith.addf %2, %4 : vector<256x128xf32>
    %cst_5 = arith.constant 0.000000e+00 : f32
    %6 = vector.broadcast %cst_5 : f32 to vector<256x128xf32>
    %7 = arith.cmpf oge, %5, %6 : vector<256x128xf32>
    %cst_6 = arith.constant 0.00999999977 : f32
    %8 = vector.broadcast %cst_6 : f32 to vector<256x128xf32>
    %9 = arith.mulf %8, %5 : vector<256x128xf32>
    %10 = arith.select %7, %5, %9 : vector<256x128xi1>, vector<256x128xf32>
    %c0_7 = arith.constant 0 : index
    %c0_8 = arith.constant 0 : index
    %11 = vector.load %arg4[%c0_7, %c0_8] : memref<128x64xf32, #tpu.memory_space<vmem>>, vector<128x64xf32>
    %cst_9 = arith.constant dense<0.000000e+00> : vector<256x64xf32>
    %12 = tpu.matmul %10, %11, %cst_9 {dimension_numbers = #tpu.dot_dimension_numbers<[1], [0], [0], [1], [0, 0, 1, 1], [], []>} : vector<256x128xf32>, vector<128x64xf32>, vector<256x64xf32> -> vector<256x64xf32>
    %c0_10 = arith.constant 0 : index
    %c0_11 = arith.constant 0 : index
    %13 = vector.load %arg5[%c0_10, %c0_11] : memref<1x64xf32, #tpu.memory_space<vmem>>, vector<1x64xf32>
    %14 = vector.broadcast %13 : vector<1x64xf32> to vector<256x64xf32>
    %15 = arith.addf %12, %14 : vector<256x64xf32>
    %c0_12 = arith.constant 0 : index
    %c0_13 = arith.constant 0 : index
    %16 = vector.load %arg6[%c0_12, %c0_13] : memref<256x64xf32, #tpu.memory_space<vmem>>, vector<256x64xf32>
    tpu.vector_store %arg6[%c0_12, %c0_13], %15 {strides = array<i32>} : memref<256x64xf32, #tpu.memory_space<vmem>>, vector<256x64xf32>,
    return
  }
  func.func @transform_0(%arg0: i32) -> (i32, i32) {
    %c0_i32 = arith.constant 0 : i32
    %c0_i32_0 = arith.constant 0 : i32
    return %arg0, %c0_i32 : i32, i32
  }
  func.func @transform_1(%arg0: i32) -> (i32, i32) {
    %c0_i32 = arith.constant 0 : i32
    %c0_i32_0 = arith.constant 0 : i32
    %c0_i32_1 = arith.constant 0 : i32
    return %c0_i32, %c0_i32_0 : i32, i32
  }
  func.func @transform_2(%arg0: i32) -> (i32, i32) {
    %c0_i32 = arith.constant 0 : i32
    %c0_i32_0 = arith.constant 0 : i32
    %c0_i32_1 = arith.constant 0 : i32
    return %c0_i32, %c0_i32_0 : i32, i32
  }
  func.func @transform_3(%arg0: i32) -> (i32, i32) {
    %c0_i32 = arith.constant 0 : i32
    %c0_i32_0 = arith.constant 0 : i32
    %c0_i32_1 = arith.constant 0 : i32
    return %c0_i32, %c0_i32_0 : i32, i32
  }
  func.func @transform_4(%arg0: i32) -> (i32, i32) {
    %c0_i32 = arith.constant 0 : i32
    %c0_i32_0 = arith.constant 0 : i32
    %c0_i32_1 = arith.constant 0 : i32
    return %c0_i32, %c0_i32_0 : i32, i32
  }
  func.func @transform_5(%arg0: i32) -> (i32, i32) {
    %c0_i32 = arith.constant 0 : i32
    %c0_i32_0 = arith.constant 0 : i32
    return %arg0, %c0_i32 : i32, i32
  }
}

</mosaic_0001>

<bundles_post_ra>
// kernel: basal_mlp_forward.1
= control target key start
LH: loop header
LB: loop body
LE: loop exit
PB: predicated region body
PF: predicated region fallthrough
CT: control target
= control target key end

     0   :  { %s1393_s18 = smov 0   ;;  %s1683_s0 = inlined_call_operand.vmem [shape: f32[512,32], index: 0, kind: input, shape index: {}]   ;;  %s1684_s1 = inlined_call_operand.vmem [shape: f32[32,128], index: 1, kind: input, shape index: {}]   ;;  %s1685_s2 = inlined_call_operand.vmem [shape: f32[1,128], index: 2, kind: input, shape index: {}]   ;;  %s1686_s3 = inlined_call_operand.vmem [shape: f32[128,64], index: 3, kind: input, shape index: {}]   ;;  %s1687_s4 = inlined_call_operand.vmem [shape: f32[1,64], index: 4, kind: input, shape index: {}]   ;;  %s1688_s5 = inlined_call_operand.vmem [shape: f32[512,64], index: 5, kind: output, shape index: {}]  }
   0x1 LB: > { %s1026_s19 = sadd.s32 4294967295, %s1361_s18   ;;  %p1030_p0 = scmp.ge.s32.totalorder %s1361_s18, 1  ;;  %s1361_s18 = sphi %s1393_s18, %s15_s18  }
   0x2   : > { %p188_p1 = scmp.lt.s32.totalorder %s1361_s18, 3 }
   0x4   : > { %p189_p2 = pnand %p1030_p0, %p188_p1 }
   0x5   : > { %v260_v0 = vld [vmem:[%s1684_s1] sm:$0xff] (!%p189_p2)  ;;  %v261_v1 = vld [vmem:[%s1684_s1 + $0x8] sm:$0xff] (!%p189_p2)  ;;  %v262_v2 = vld [vmem:[%s1684_s1 + $0x10] sm:$0xff] (!%p189_p2)  ;;  %s1031_s26 = sshll.u32 (!%p189_p2), %s1026_s19, 5  ;;  %vm271_vm0 = vcmask (!%p189_p2), 261120  }
   0x6   : > { %192 = sbr.rel (%p189_p2) target bundleno = 513 (0x201), region = 40  ;;  %v1291_v3 = vpack.c.bf16 (!%p189_p2), %v261_v1, %v260_v0  ;;  %v263_v4 = vld [vmem:[%s1684_s1 + $0x18] sm:$0xff] (!%p189_p2)  ;;  %p217_p3 = scmp.lt.s32.totalorder (!%p189_p2), %s1031_s26, 63  ;;  %v689_v5 = vld [vmem:[%s1686_s3] sm:$0xff] (!%p189_p2)  ;;  %v690_v6 = vld [vmem:[%s1686_s3 + $0x8] sm:$0xff] (!%p189_p2) }
   0x7   : > { %v1295_v7 = vpack.c.bf16 (!%p189_p2), %v263_v4, %v262_v2  ;;  %v1299_v8 = vpack.c.bf16 (!%p189_p2), %v690_v6, %v689_v5  ;;  %v691_v9 = vld [vmem:[%s1686_s3 + $0x10] sm:$0xff] (!%p189_p2)  ;;  %v692_v10 = vld [vmem:[%s1686_s3 + $0x18] sm:$0xff] (!%p189_p2)  ;;  %v693_v12 = vld [vmem:[%s1686_s3 + $0x20] sm:$0xff] (!%p189_p2) }
   0x8   : > { %1292 = vmatprep.subr.bf16.mxu0 (!%p189_p2), %v1291_v3  ;;  %v1303_v11 = vpack.c.bf16 (!%p189_p2), %v692_v10, %v691_v9  ;;  %v694_v13 = vld [vmem:[%s1686_s3 + $0x28] sm:$0xff] (!%p189_p2)  ;;  %v695_v18 = vld [vmem:[%s1686_s3 + $0x30] sm:$0xff] (!%p189_p2)  ;;  %v696_v19 = vld [vmem:[%s1686_s3 + $0x38] sm:$0xff] (!%p189_p2) }
   0x9   : > { %1294 = vmatpush3.bf16.msra.mxu0 (!%p189_p2), %v1291_v3  ;;  %1331 = vmatprep.subr.bf16.mxu1 (!%p189_p2), %v1299_v8  ;;  %v1307_v16 = vpack.c.bf16 (!%p189_p2), %v694_v13, %v693_v12  ;;  %v1311_v21 = vpack.c.bf16 (!%p189_p2), %v696_v19, %v695_v18  ;;  %v697_v23 = vld [vmem:[%s1686_s3 + $0x40] sm:$0xff] (!%p189_p2)  ;;  %v698_v24 = vld [vmem:[%s1686_s3 + $0x48] sm:$0xff] (!%p189_p2)  ;;  %v699_v28 = vld [vmem:[%s1686_s3 + $0x50] sm:$0xff] (!%p189_p2) }
   0xa   : > { %1296 = vmatprep.subr.bf16.mxu0 (!%p189_p2), %v1295_v7  ;;  %1339 = vmatpush3.bf16.msra.mxu1 (!%p189_p2), %v1299_v8  ;;  %v1315_v26 = vpack.c.bf16 (!%p189_p2), %v698_v24, %v697_v23  ;;  %v700_v29 = vld [vmem:[%s1686_s3 + $0x58] sm:$0xff] (!%p189_p2)  ;;  %v701_v56 = vld [vmem:[%s1686_s3 + $0x60] sm:$0xff] (!%p189_p2)  ;;  %v702_v57 = vld [vmem:[%s1686_s3 + $0x68] sm:$0xff] (!%p189_p2) }
   0xb   : > { %1332 = vmatprep.subr.bf16.mxu1 (!%p189_p2), %v1303_v11  ;;  %v1319_v31 = vpack.c.bf16 (!%p189_p2), %v700_v29, %v699_v28  ;;  %v1323_v58 = vpack.c.bf16 (!%p189_p2), %v702_v57, %v701_v56  ;;  %v703_v59 = vld [vmem:[%s1686_s3 + $0x70] sm:$0xff] (!%p189_p2)  ;;  %v704_v60 = vld [vmem:[%s1686_s3 + $0x78] sm:$0xff] (!%p189_p2)  ;;  %v1538_v62 = vld [vmem:[%s1685_s2] ss:$0 sm:$0xff] (!%p189_p2) }
   0xc   : > { %v1327_v61 = vpack.c.bf16 (!%p189_p2), %v704_v60, %v703_v59 }
   0xd   : > { %s1690_s26 = smov (!%p217_p3, %s1031_s26), 63  ;;  %1298 = vmatpush3.bf16.msra.mxu0 %v1295_v7 }
   0xe   : > { %s1032_s12 = sshll.u32 %s1690_s26, 3  ;;  %1300 = vmatprep.subr.bf16.mxu0 %v1299_v8  ;;  %1340 = vmatpush3.bf16.msra.mxu1 %v1303_v11 }
   0xf   : > { %s1439_s20 = scalar_lea.vmem %s1683_s0, %s1032_s12  ;;  %1333 = vmatprep.subr.bf16.mxu1 %v1307_v16  ;;  %s1582_s25 = scalar_lea.vmem %s1688_s5, %s1032_s12 }
  0x10   : > { %v228_v14 = vld [vmem:[%s1439_s20] sm:$0xff]  ;;  %v229_v15 = vld [vmem:[%s1439_s20 + $0x8] sm:$0xff]  ;;  %v230_v17 = vld [vmem:[%s1439_s20 + $0x10] sm:$0xff] }
  0x11   : > { %1163 = vmatprep.mubr.msk.f32.mxu0 %vm271_vm0, %v228_v14  ;;  %v231_v20 = vld [vmem:[%s1439_s20 + $0x18] sm:$0xff]  ;;  %v232_v22 = vld [vmem:[%s1439_s20 + $0x20] sm:$0xff]  ;;  %v233_v25 = vld [vmem:[%s1439_s20 + $0x28] sm:$0xff] }
  0x12   : > { %1164 = vmatmul.mubr.msk.f32.vlgmr.msra.gmra.mrb[0].mxu0 %vm271_vm0, %v229_v15  ;;  %1341 = vmatpush3.bf16.msra.mxu1 %v1307_v16  ;;  %v234_v27 = vld [vmem:[%s1439_s20 + $0x30] sm:$0xff]  ;;  %v235_v30 = vld [vmem:[%s1439_s20 + $0x38] sm:$0xff]  ;;  %v236_v32 = vld [vmem:[%s1439_s20 + $0x40] sm:$0xff] }
  0x13   : > { %1166 = vmatprep.mubr.msk.f32.mxu0 %vm271_vm0, %v230_v17  ;;  %1302 = vmatpush3.bf16.msra.mxu0 %v1299_v8  ;;  %v237_v33 = vld [vmem:[%s1439_s20 + $0x48] sm:$0xff]  ;;  %v238_v34 = vld [vmem:[%s1439_s20 + $0x50] sm:$0xff]  ;;  %v239_v35 = vld [vmem:[%s1439_s20 + $0x58] sm:$0xff] }
  0x14   : > { %1304 = vmatprep.subr.bf16.mxu0 %v1303_v11  ;;  %1334 = vmatprep.subr.bf16.mxu1 %v1311_v21  ;;  %v240_v36 = vld [vmem:[%s1439_s20 + $0x60] sm:$0xff]  ;;  %v241_v37 = vld [vmem:[%s1439_s20 + $0x68] sm:$0xff]  ;;  %v242_v38 = vld [vmem:[%s1439_s20 + $0x70] sm:$0xff] }
  0x15   : > { %v243_v39 = vld [vmem:[%s1439_s20 + $0x78] sm:$0xff]  ;;  %v244_v40 = vld [vmem:[%s1439_s20 + $0x80] sm:$0xff]  ;;  %v245_v41 = vld [vmem:[%s1439_s20 + $0x88] sm:$0xff] }
  0x16   : > { %1167 = vmatmul.mubr.msk.f32.gmra.mrb[2].mxu0 %vm271_vm0, %v231_v20  ;;  %1342 = vmatpush3.bf16.msra.mxu1 %v1311_v21  ;;  %v246_v42 = vld [vmem:[%s1439_s20 + $0x90] sm:$0xff]  ;;  %v247_v43 = vld [vmem:[%s1439_s20 + $0x98] sm:$0xff]  ;;  %v248_v44 = vld [vmem:[%s1439_s20 + $0xa0] sm:$0xff] }
  0x17   : > { %1169 = vmatprep.mubr.msk.f32.mxu0 %vm271_vm0, %v232_v22  ;;  %1306 = vmatpush3.bf16.msra.mxu0 %v1303_v11  ;;  %v249_v45 = vld [vmem:[%s1439_s20 + $0xa8] sm:$0xff]  ;;  %v250_v46 = vld [vmem:[%s1439_s20 + $0xb0] sm:$0xff]  ;;  %v251_v47 = vld [vmem:[%s1439_s20 + $0xb8] sm:$0xff] }
  0x18   : > { %1308 = vmatprep.subr.bf16.mxu0 %v1307_v16  ;;  %1335 = vmatprep.subr.bf16.mxu1 %v1315_v26  ;;  %v252_v48 = vld [vmem:[%s1439_s20 + $0xc0] sm:$0xff]  ;;  %v253_v49 = vld [vmem:[%s1439_s20 + $0xc8] sm:$0xff]  ;;  %v254_v50 = vld [vmem:[%s1439_s20 + $0xd0] sm:$0xff] }
  0x19   : > { %v255_v51 = vld [vmem:[%s1439_s20 + $0xd8] sm:$0xff]  ;;  %v256_v52 = vld [vmem:[%s1439_s20 + $0xe0] sm:$0xff]  ;;  %v257_v53 = vld [vmem:[%s1439_s20 + $0xe8] sm:$0xff] }
  0x1a   : > { %1170 = vmatmul.mubr.msk.f32.gmra.mrb[4].mxu0 %vm271_vm0, %v233_v25  ;;  %1343 = vmatpush3.bf16.msra.mxu1 %v1315_v26  ;;  %v258_v54 = vld [vmem:[%s1439_s20 + $0xf0] sm:$0xff]  ;;  %v259_v55 = vld [vmem:[%s1439_s20 + $0xf8] sm:$0xff] }
  0x1b   : > { %1172 = vmatprep.mubr.msk.f32.mxu0 %vm271_vm0, %v234_v27  ;;  %1310 = vmatpush3.bf16.msra.mxu0 %v1307_v16 }
  0x1c   : > { %1312 = vmatprep.subr.bf16.mxu0 %v1311_v21  ;;  %1336 = vmatprep.subr.bf16.mxu1 %v1319_v31 }
  0x1e   : > { %1173 = vmatmul.mubr.msk.f32.gmra.mrb[6].mxu0 %vm271_vm0, %v235_v30  ;;  %1344 = vmatpush3.bf16.msra.mxu1 %v1319_v31 }
  0x1f   : > { %1175 = vmatprep.mubr.msk.f32.mxu0 %vm271_vm0, %v236_v32  ;;  %1314 = vmatpush3.bf16.msra.mxu0 %v1311_v21 }
  0x20   : > { %1316 = vmatprep.subr.bf16.mxu0 %v1315_v26  ;;  %1337 = vmatprep.subr.bf16.mxu1 %v1323_v58 }
  0x22   : > { %1176 = vmatmul.mubr.msk.f32.gmra.mrb[8].mxu0 %vm271_vm0, %v237_v33  ;;  %1345 = vmatpush3.bf16.msra.mxu1 %v1323_v58 }
  0x23   : > { %1178 = vmatprep.mubr.msk.f32.mxu0 %vm271_vm0, %v238_v34  ;;  %1318 = vmatpush3.bf16.msra.mxu0 %v1315_v26 }
  0x24   : > { %1320 = vmatprep.subr.bf16.mxu0 %v1319_v31  ;;  %1338 = vmatprep.subr.bf16.mxu1 %v1327_v61 }
  0x26   : > { %1179 = vmatmul.mubr.msk.f32.gmra.mrb[10].mxu0 %vm271_vm0, %v239_v35  ;;  %1346 = vmatpush3.bf16.msra.mxu1 %v1327_v61 }
  0x27   : > { %1181 = vmatprep.mubr.msk.f32.mxu0 %vm271_vm0, %v240_v36  ;;  %1322 = vmatpush3.bf16.msra.mxu0 %v1319_v31 }
  0x28   : > { %1324 = vmatprep.subr.bf16.mxu0 %v1323_v58 }
  0x2a   : > { %1182 = vmatmul.mubr.msk.f32.gmra.mrb[12].mxu0 %vm271_vm0, %v241_v37 }
  0x2b   : > { %1184 = vmatprep.mubr.msk.f32.mxu0 %vm271_vm0, %v242_v38  ;;  %1326 = vmatpush3.bf16.msra.mxu0 %v1323_v58 }
  0x2c   : > { %1328 = vmatprep.subr.bf16.mxu0 %v1327_v61 }
  0x2e   : > { %1185 = vmatmul.mubr.msk.f32.gmra.mrb[14].mxu0 %vm271_vm0, %v243_v39 }
  0x2f   : > { %1187 = vmatprep.mubr.msk.f32.mxu0 %vm271_vm0, %v244_v40  ;;  %1330 = vmatpush3.bf16.msra.mxu0 %v1327_v61 }
  0x32   : > { %1188 = vmatmul.mubr.msk.f32.gmra.mrb[16].mxu0 %vm271_vm0, %v245_v41 }
  0x33   : > { %1190 = vmatprep.mubr.msk.f32.mxu0 %vm271_vm0, %v246_v42 }
  0x36   : > { %1191 = vmatmul.mubr.msk.f32.gmra.mrb[18].mxu0 %vm271_vm0, %v247_v43 }
  0x37   : > { %1193 = vmatprep.mubr.msk.f32.mxu0 %vm271_vm0, %v248_v44 }
  0x3a   : > { %1194 = vmatmul.mubr.msk.f32.gmra.mrb[20].mxu0 %vm271_vm0, %v249_v45 }
  0x3b   : > { %1196 = vmatprep.mubr.msk.f32.mxu0 %vm271_vm0, %v250_v46 }
  0x3e   : > { %1197 = vmatmul.mubr.msk.f32.gmra.mrb[22].mxu0 %vm271_vm0, %v251_v47 }
  0x3f   : > { %1199 = vmatprep.mubr.msk.f32.mxu0 %vm271_vm0, %v252_v48 }
  0x42   : > { %1200 = vmatmul.mubr.msk.f32.gmra.mrb[24].mxu0 %vm271_vm0, %v253_v49 }
  0x43   : > { %1202 = vmatprep.mubr.msk.f32.mxu0 %vm271_vm0, %v254_v50 }
  0x46   : > { %1203 = vmatmul.mubr.msk.f32.gmra.mrb[26].mxu0 %vm271_vm0, %v255_v51 }
  0x47   : > { %1205 = vmatprep.mubr.msk.f32.mxu0 %vm271_vm0, %v256_v52 }
  0x4a   : > { %1206 = vmatmul.mubr.msk.f32.gmra.mrb[28].mxu0 %vm271_vm0, %v257_v53 }
  0x4b   : > { %1208 = vmatprep.mubr.msk.f32.mxu0 %vm271_vm0, %v258_v54 }
  0x4e   : > { %1209 = vmatmul.mubr.msk.f32.gmra.mrb[30].mxu0 %vm271_vm0, %v259_v55 }
  0xe5   : > { %v1165_v63 = vpop.f32.mrb[0].mxu0 }
  0xe6   : > { %v440_v0 = vadd.f32 %v1165_v63, %v1538_v62  ;;  %v434_v1 = vpop.f32.mrb[1].mxu0 }
  0xe7   : > { %v435_v2 = vadd.f32 %v1538_v62, %v434_v1 }
  0xe8   : > { %v626_v3 = vmul.f32 0.01, %v440_v0  ;;  %vm594_vm1 = vcmp.ge.f32.partialorder %v440_v0, 0.0 }
  0xe9   : > { %v625_v4 = vmul.f32 0.01, %v435_v2  ;;  %v1168_v5 = vpop.f32.mrb[2].mxu0  ;;  %vm593_vm2 = vcmp.ge.f32.partialorder %v435_v2, 0.0 }
  0xea   : > { %v450_v6 = vadd.f32 %v1168_v5, %v1538_v62  ;;  %v444_v7 = vpop.f32.mrb[3].mxu0  ;;  %v658_v10 = vsel %vm594_vm1, %v440_v0, %v626_v3 }
  0xeb   : > { %v445_v8 = vadd.f32 %v1538_v62, %v444_v7  ;;  %v657_v9 = vsel %vm593_vm2, %v435_v2, %v625_v4 }
  0xec   : > { %v628_v11 = vmul.f32 0.01, %v450_v6  ;;  %1243 = vmatprep.mubr.f32.mxu0 %v657_v9  ;;  %vm596_vm4 = vcmp.ge.f32.partialorder %v450_v6, 0.0 }
  0xed   : > { %v627_v12 = vmul.f32 0.01, %v445_v8  ;;  %v1171_v13 = vpop.f32.mrb[4].mxu0  ;;  %1244 = vmatmul.mubr.f32.vlgmr.msra.gmra.mrb[32].mxu0 %v658_v10  ;;  %vm595_vm3 = vcmp.ge.f32.partialorder %v445_v8, 0.0 }
  0xee   : > { %v460_v14 = vadd.f32 %v1171_v13, %v1538_v62  ;;  %v454_v15 = vpop.f32.mrb[5].mxu0  ;;  %v660_v19 = vsel %vm596_vm4, %v450_v6, %v628_v11 }
  0xef   : > { %v455_v16 = vadd.f32 %v1538_v62, %v454_v15  ;;  %v659_v17 = vsel %vm595_vm3, %v445_v8, %v627_v12 }
  0xf0   : > { %v630_v18 = vmul.f32 0.01, %v460_v14  ;;  %1246 = vmatprep.mubr.f32.mxu0 %v659_v17  ;;  %vm598_vm6 = vcmp.ge.f32.partialorder %v460_v14, 0.0 }
  0xf1   : > { %v629_v20 = vmul.f32 0.01, %v455_v16  ;;  %v1174_v21 = vpop.f32.mrb[6].mxu0  ;;  %1247 = vmatmul.mubr.f32.gmra.mrb[34].mxu0 %v660_v19  ;;  %vm597_vm5 = vcmp.ge.f32.partialorder %v455_v16, 0.0 }
  0xf2   : > { %v470_v22 = vadd.f32 %v1174_v21, %v1538_v62  ;;  %v464_v23 = vpop.f32.mrb[7].mxu0  ;;  %v662_v27 = vsel %vm598_vm6, %v460_v14, %v630_v18 }
  0xf3   : > { %v465_v24 = vadd.f32 %v1538_v62, %v464_v23  ;;  %v661_v25 = vsel %vm597_vm5, %v455_v16, %v629_v20 }
  0xf4   : > { %v632_v26 = vmul.f32 0.01, %v470_v22  ;;  %1249 = vmatprep.mubr.f32.mxu0 %v661_v25  ;;  %vm600_vm8 = vcmp.ge.f32.partialorder %v470_v22, 0.0 }
  0xf5   : > { %v1177_v28 = vpop.f32.mrb[8].mxu0  ;;  %1250 = vmatmul.mubr.f32.gmra.mrb[36].mxu0 %v662_v27  ;;  %vm599_vm7 = vcmp.ge.f32.partialorder %v465_v24, 0.0  ;;  %v631_v29 = vmul.f32 0.01, %v465_v24 }
  0xf6   : > { %v480_v30 = vadd.f32 %v1177_v28, %v1538_v62  ;;  %v474_v31 = vpop.f32.mrb[9].mxu0  ;;  %v664_v35 = vsel %vm600_vm8, %v470_v22, %v632_v26 }
  0xf7   : > { %v475_v32 = vadd.f32 %v1538_v62, %v474_v31  ;;  %v663_v33 = vsel %vm599_vm7, %v465_v24, %v631_v29 }
  0xf8   : > { %v634_v34 = vmul.f32 0.01, %v480_v30  ;;  %1252 = vmatprep.mubr.f32.mxu1 %v663_v33  ;;  %vm602_vm10 = vcmp.ge.f32.partialorder %v480_v30, 0.0 }
  0xf9   : > { %v633_v36 = vmul.f32 0.01, %v475_v32  ;;  %v1180_v37 = vpop.f32.mrb[10].mxu0  ;;  %1253 = vmatmul.mubr.f32.vlgmr.msra.gmra.mrb[0].mxu1 %v664_v35  ;;  %vm601_vm9 = vcmp.ge.f32.partialorder %v475_v32, 0.0 }
  0xfa   : > { %v490_v38 = vadd.f32 %v1180_v37, %v1538_v62  ;;  %v484_v39 = vpop.f32.mrb[11].mxu0  ;;  %v666_v43 = vsel %vm602_vm10, %v480_v30, %v634_v34 }
  0xfb   : > { %v485_v40 = vadd.f32 %v1538_v62, %v484_v39  ;;  %v665_v41 = vsel %vm601_vm9, %v475_v32, %v633_v36 }
  0xfc   : > { %v636_v42 = vmul.f32 0.01, %v490_v38  ;;  %1255 = vmatprep.mubr.f32.mxu1 %v665_v41  ;;  %vm604_vm12 = vcmp.ge.f32.partialorder %v490_v38, 0.0 }
  0xfd   : > { %v635_v44 = vmul.f32 0.01, %v485_v40  ;;  %v1183_v45 = vpop.f32.mrb[12].mxu0  ;;  %1256 = vmatmul.mubr.f32.gmra.mrb[2].mxu1 %v666_v43  ;;  %vm603_vm11 = vcmp.ge.f32.partialorder %v485_v40, 0.0 }
  0xfe   : > { %v500_v46 = vadd.f32 %v1183_v45, %v1538_v62  ;;  %v494_v47 = vpop.f32.mrb[13].mxu0  ;;  %v668_v51 = vsel %vm604_vm12, %v490_v38, %v636_v42 }
  0xff   : > { %v495_v48 = vadd.f32 %v1538_v62, %v494_v47  ;;  %v667_v49 = vsel %vm603_vm11, %v485_v40, %v635_v44 }
 0x100   : > { %v638_v50 = vmul.f32 0.01, %v500_v46  ;;  %1258 = vmatprep.mubr.f32.mxu1 %v667_v49  ;;  %vm606_vm14 = vcmp.ge.f32.partialorder %v500_v46, 0.0 }
 0x101   : > { %v637_v52 = vmul.f32 0.01, %v495_v48  ;;  %v1186_v53 = vpop.f32.mrb[14].mxu0  ;;  %1259 = vmatmul.mubr.f32.gmra.mrb[4].mxu1 %v668_v51  ;;  %vm605_vm13 = vcmp.ge.f32.partialorder %v495_v48, 0.0 }
 0x102   : > { %v510_v54 = vadd.f32 %v1186_v53, %v1538_v62  ;;  %v504_v55 = vpop.f32.mrb[15].mxu0  ;;  %v670_v59 = vsel %vm606_vm14, %v500_v46, %v638_v50 }
 0x103   : > { %v505_v56 = vadd.f32 %v1538_v62, %v504_v55  ;;  %v669_v57 = vsel %vm605_vm13, %v495_v48, %v637_v52 }
 0x104   : > { %v640_v58 = vmul.f32 0.01, %v510_v54  ;;  %1261 = vmatprep.mubr.f32.mxu1 %v669_v57  ;;  %vm608_vm0 = vcmp.ge.f32.partialorder %v510_v54, 0.0 }
 0x105   : > { %v639_v60 = vmul.f32 0.01, %v505_v56  ;;  %v1189_v61 = vpop.f32.mrb[16].mxu0  ;;  %1262 = vmatmul.mubr.f32.gmra.mrb[6].mxu1 %v670_v59  ;;  %vm607_vm15 = vcmp.ge.f32.partialorder %v505_v56, 0.0 }
 0x106   : > { %v520_v63 = vadd.f32 %v1189_v61, %v1538_v62  ;;  %v514_v0 = vpop.f32.mrb[17].mxu0  ;;  %v672_v4 = vsel %vm608_vm0, %v510_v54, %v640_v58 }
 0x107   : > { %v515_v1 = vadd.f32 %v1538_v62, %v514_v0  ;;  %v671_v2 = vsel %vm607_vm15, %v505_v56, %v639_v60 }
 0x108   : > { %v642_v3 = vmul.f32 0.01, %v520_v63  ;;  %1264 = vmatprep.mubr.f32.mxu1 %v671_v2  ;;  %vm610_vm2 = vcmp.ge.f32.partialorder %v520_v63, 0.0 }
 0x109   : > { %v641_v5 = vmul.f32 0.01, %v515_v1  ;;  %v1192_v6 = vpop.f32.mrb[18].mxu0  ;;  %1265 = vmatmul.mubr.f32.gmra.mrb[8].mxu1 %v672_v4  ;;  %vm609_vm1 = vcmp.ge.f32.partialorder %v515_v1, 0.0 }
 0x10a   : > { %v530_v7 = vadd.f32 %v1192_v6, %v1538_v62  ;;  %v524_v8 = vpop.f32.mrb[19].mxu0  ;;  %v674_v12 = vsel %vm610_vm2, %v520_v63, %v642_v3 }
 0x10b   : > { %v525_v9 = vadd.f32 %v1538_v62, %v524_v8  ;;  %v673_v10 = vsel %vm609_vm1, %v515_v1, %v641_v5  ;;  %v1575_v1 = vld [vmem:[%s1687_s4] ss:$0 sm:$0xff]  ;;  %vm937_vm1 = vcmask 523264  }
 0x10c   : > { %v644_v11 = vmul.f32 0.01, %v530_v7  ;;  %1267 = vmatprep.mubr.f32.mxu1 %v673_v10  ;;  %vm612_vm4 = vcmp.ge.f32.partialorder %v530_v7, 0.0 }
 0x10d   : > { %v643_v13 = vmul.f32 0.01, %v525_v9  ;;  %v1195_v14 = vpop.f32.mrb[20].mxu0  ;;  %1268 = vmatmul.mubr.f32.gmra.mrb[10].mxu1 %v674_v12  ;;  %vm611_vm3 = vcmp.ge.f32.partialorder %v525_v9, 0.0 }
 0x10e   : > { %v540_v15 = vadd.f32 %v1195_v14, %v1538_v62  ;;  %v534_v16 = vpop.f32.mrb[21].mxu0  ;;  %v676_v20 = vsel %vm612_vm4, %v530_v7, %v644_v11 }
 0x10f   : > { %v535_v17 = vadd.f32 %v1538_v62, %v534_v16  ;;  %v675_v18 = vsel %vm611_vm3, %v525_v9, %v643_v13 }
 0x110   : > { %v646_v19 = vmul.f32 0.01, %v540_v15  ;;  %1270 = vmatprep.mubr.f32.mxu1 %v675_v18  ;;  %vm614_vm6 = vcmp.ge.f32.partialorder %v540_v15, 0.0 }
 0x111   : > { %v645_v21 = vmul.f32 0.01, %v535_v17  ;;  %v1198_v22 = vpop.f32.mrb[22].mxu0  ;;  %1271 = vmatmul.mubr.f32.gmra.mrb[12].mxu1 %v676_v20  ;;  %vm613_vm5 = vcmp.ge.f32.partialorder %v535_v17, 0.0 }
 0x112   : > { %v550_v23 = vadd.f32 %v1198_v22, %v1538_v62  ;;  %v544_v24 = vpop.f32.mrb[23].mxu0  ;;  %v678_v28 = vsel %vm614_vm6, %v540_v15, %v646_v19 }
 0x113   : > { %v545_v25 = vadd.f32 %v1538_v62, %v544_v24  ;;  %v677_v26 = vsel %vm613_vm5, %v535_v17, %v645_v21 }
 0x114   : > { %v648_v27 = vmul.f32 0.01, %v550_v23  ;;  %1273 = vmatprep.mubr.f32.mxu1 %v677_v26  ;;  %vm616_vm8 = vcmp.ge.f32.partialorder %v550_v23, 0.0 }
 0x115   : > { %v647_v29 = vmul.f32 0.01, %v545_v25  ;;  %v1201_v30 = vpop.f32.mrb[24].mxu0  ;;  %1274 = vmatmul.mubr.f32.gmra.mrb[14].mxu1 %v678_v28  ;;  %vm615_vm7 = vcmp.ge.f32.partialorder %v545_v25, 0.0 }
 0x116   : > { %v560_v31 = vadd.f32 %v1201_v30, %v1538_v62  ;;  %v554_v32 = vpop.f32.mrb[25].mxu0  ;;  %v680_v36 = vsel %vm616_vm8, %v550_v23, %v648_v27 }
 0x117   : > { %v555_v33 = vadd.f32 %v1538_v62, %v554_v32  ;;  %v679_v34 = vsel %vm615_vm7, %v545_v25, %v647_v29 }
 0x118   : > { %v650_v35 = vmul.f32 0.01, %v560_v31  ;;  %1276 = vmatprep.mubr.f32.mxu1 %v679_v34  ;;  %vm618_vm10 = vcmp.ge.f32.partialorder %v560_v31, 0.0 }
 0x119   : > { %v649_v37 = vmul.f32 0.01, %v555_v33  ;;  %v1204_v38 = vpop.f32.mrb[26].mxu0  ;;  %1277 = vmatmul.mubr.f32.gmra.mrb[16].mxu1 %v680_v36  ;;  %vm617_vm9 = vcmp.ge.f32.partialorder %v555_v33, 0.0 }
 0x11a   : > { %v570_v39 = vadd.f32 %v1204_v38, %v1538_v62  ;;  %v564_v40 = vpop.f32.mrb[27].mxu0  ;;  %v682_v44 = vsel %vm618_vm10, %v560_v31, %v650_v35 }
 0x11b   : > { %v565_v41 = vadd.f32 %v1538_v62, %v564_v40  ;;  %v681_v42 = vsel %vm617_vm9, %v555_v33, %v649_v37 }
 0x11c   : > { %v652_v43 = vmul.f32 0.01, %v570_v39  ;;  %1279 = vmatprep.mubr.f32.mxu1 %v681_v42  ;;  %vm620_vm12 = vcmp.ge.f32.partialorder %v570_v39, 0.0 }
 0x11d   : > { %v651_v45 = vmul.f32 0.01, %v565_v41  ;;  %v1207_v46 = vpop.f32.mrb[28].mxu0  ;;  %1280 = vmatmul.mubr.f32.gmra.mrb[18].mxu1 %v682_v44  ;;  %vm619_vm11 = vcmp.ge.f32.partialorder %v565_v41, 0.0 }
 0x11e   : > { %v580_v47 = vadd.f32 %v1207_v46, %v1538_v62  ;;  %v574_v48 = vpop.f32.mrb[29].mxu0  ;;  %v684_v52 = vsel %vm620_vm12, %v570_v39, %v652_v43 }
 0x11f   : > { %v575_v49 = vadd.f32 %v1538_v62, %v574_v48  ;;  %v683_v50 = vsel %vm619_vm11, %v565_v41, %v651_v45 }
 0x120   : > { %v654_v51 = vmul.f32 0.01, %v580_v47  ;;  %1282 = vmatprep.mubr.f32.mxu1 %v683_v50  ;;  %vm622_vm14 = vcmp.ge.f32.partialorder %v580_v47, 0.0 }
 0x121   : > { %v653_v53 = vmul.f32 0.01, %v575_v49  ;;  %v1210_v54 = vpop.f32.mrb[30].mxu0  ;;  %1283 = vmatmul.mubr.f32.gmra.mrb[20].mxu1 %v684_v52  ;;  %vm621_vm13 = vcmp.ge.f32.partialorder %v575_v49, 0.0 }
 0x122   : > { %v590_v55 = vadd.f32 %v1210_v54, %v1538_v62  ;;  %v584_v56 = vpop.f32.mrb[31].mxu0  ;;  %v686_v60 = vsel %vm622_vm14, %v580_v47, %v654_v51 }
 0x123   : > { %v585_v57 = vadd.f32 %v1538_v62, %v584_v56  ;;  %v685_v58 = vsel %vm621_vm13, %v575_v49, %v653_v53 }
 0x124   : > { %v656_v59 = vmul.f32 0.01, %v590_v55  ;;  %1285 = vmatprep.mubr.f32.mxu1 %v685_v58  ;;  %vm624_vm0 = vcmp.ge.f32.partialorder %v590_v55, 0.0 }
 0x125   : > { %v655_v61 = vmul.f32 0.01, %v585_v57  ;;  %1286 = vmatmul.mubr.f32.gmra.mrb[22].mxu1 %v686_v60  ;;  %vm623_vm15 = vcmp.ge.f32.partialorder %v585_v57, 0.0 }
 0x126   : > { %v688_v0 = vsel %vm624_vm0, %v590_v55, %v656_v59 }
 0x127   : > { %v687_v63 = vsel %vm623_vm15, %v585_v57, %v655_v61 }
 0x128   : > { %1288 = vmatprep.mubr.f32.mxu1 %v687_v63 }
 0x129   : > { %1289 = vmatmul.mubr.f32.gmra.mrb[24].mxu1 %v688_v0 }
 0x1c0   : > { %v1245_v62 = vpop.f32.mrb[32].mxu0 }
 0x1c1   : > { %v784_v2 = vadd.f32 %v1245_v62, %v1575_v1  ;;  %v778_v3 = vpop.f32.mrb[33].mxu0 }
 0x1c2   : > { %v779_v4 = vadd.f32 %v1575_v1, %v778_v3 }
 0x1c3   : > { %939 = vst.msk [vmem:[%s1582_s25 + $0x8] sm:$0xff] %vm937_vm1, %v784_v2 }
 0x1c4   : > { %938 = vst.msk [vmem:[%s1582_s25] sm:$0xff] %vm937_vm1, %v779_v4  ;;  %v1248_v5 = vpop.f32.mrb[34].mxu0 }
 0x1c5   : > { %v794_v6 = vadd.f32 %v1248_v5, %v1575_v1  ;;  %v788_v7 = vpop.f32.mrb[35].mxu0 }
 0x1c6   : > { %v789_v8 = vadd.f32 %v1575_v1, %v788_v7 }
 0x1c7   : > { %941 = vst.msk [vmem:[%s1582_s25 + $0x18] sm:$0xff] %vm937_vm1, %v794_v6 }
 0x1c8   : > { %940 = vst.msk [vmem:[%s1582_s25 + $0x10] sm:$0xff] %vm937_vm1, %v789_v8  ;;  %v1251_v9 = vpop.f32.mrb[36].mxu0 }
 0x1c9   : > { %v804_v10 = vadd.f32 %v1251_v9, %v1575_v1  ;;  %v798_v11 = vpop.f32.mrb[37].mxu0 }
 0x1ca   : > { %v799_v12 = vadd.f32 %v1575_v1, %v798_v11 }
 0x1cb   : > { %943 = vst.msk [vmem:[%s1582_s25 + $0x28] sm:$0xff] %vm937_vm1, %v804_v10 }
 0x1cc   : > { %942 = vst.msk [vmem:[%s1582_s25 + $0x20] sm:$0xff] %vm937_vm1, %v799_v12  ;;  %v1254_v13 = vpop.f32.mrb[0].mxu1 }
 0x1cd   : > { %v814_v14 = vadd.f32 %v1254_v13, %v1575_v1  ;;  %v808_v15 = vpop.f32.mrb[1].mxu1 }
 0x1ce   : > { %v809_v16 = vadd.f32 %v1575_v1, %v808_v15 }
 0x1cf   : > { %945 = vst.msk [vmem:[%s1582_s25 + $0x38] sm:$0xff] %vm937_vm1, %v814_v14 }
 0x1d0   : > { %944 = vst.msk [vmem:[%s1582_s25 + $0x30] sm:$0xff] %vm937_vm1, %v809_v16  ;;  %v1257_v17 = vpop.f32.mrb[2].mxu1 }
 0x1d1   : > { %v824_v18 = vadd.f32 %v1257_v17, %v1575_v1  ;;  %v818_v19 = vpop.f32.mrb[3].mxu1 }
 0x1d2   : > { %v819_v20 = vadd.f32 %v1575_v1, %v818_v19 }
 0x1d3   : > { %947 = vst.msk [vmem:[%s1582_s25 + $0x48] sm:$0xff] %vm937_vm1, %v824_v18 }
 0x1d4   : > { %946 = vst.msk [vmem:[%s1582_s25 + $0x40] sm:$0xff] %vm937_vm1, %v819_v20  ;;  %v1260_v21 = vpop.f32.mrb[4].mxu1 }
 0x1d5   : > { %v834_v22 = vadd.f32 %v1260_v21, %v1575_v1  ;;  %v828_v23 = vpop.f32.mrb[5].mxu1 }
 0x1d6   : > { %v829_v24 = vadd.f32 %v1575_v1, %v828_v23 }
 0x1d7   : > { %949 = vst.msk [vmem:[%s1582_s25 + $0x58] sm:$0xff] %vm937_vm1, %v834_v22 }
 0x1d8   : > { %948 = vst.msk [vmem:[%s1582_s25 + $0x50] sm:$0xff] %vm937_vm1, %v829_v24  ;;  %v1263_v25 = vpop.f32.mrb[6].mxu1 }
 0x1d9   : > { %v844_v26 = vadd.f32 %v1263_v25, %v1575_v1  ;;  %v838_v27 = vpop.f32.mrb[7].mxu1 }
 0x1da   : > { %v839_v28 = vadd.f32 %v1575_v1, %v838_v27 }
 0x1db   : > { %951 = vst.msk [vmem:[%s1582_s25 + $0x68] sm:$0xff] %vm937_vm1, %v844_v26 }
 0x1dc   : > { %950 = vst.msk [vmem:[%s1582_s25 + $0x60] sm:$0xff] %vm937_vm1, %v839_v28  ;;  %v1266_v29 = vpop.f32.mrb[8].mxu1 }
 0x1dd   : > { %v854_v30 = vadd.f32 %v1266_v29, %v1575_v1  ;;  %v848_v31 = vpop.f32.mrb[9].mxu1 }
 0x1de   : > { %v849_v32 = vadd.f32 %v1575_v1, %v848_v31 }
 0x1df   : > { %953 = vst.msk [vmem:[%s1582_s25 + $0x78] sm:$0xff] %vm937_vm1, %v854_v30 }
 0x1e0   : > { %952 = vst.msk [vmem:[%s1582_s25 + $0x70] sm:$0xff] %vm937_vm1, %v849_v32  ;;  %v1269_v33 = vpop.f32.mrb[10].mxu1 }
 0x1e1   : > { %v864_v34 = vadd.f32 %v1269_v33, %v1575_v1  ;;  %v858_v35 = vpop.f32.mrb[11].mxu1 }
 0x1e2   : > { %v859_v36 = vadd.f32 %v1575_v1, %v858_v35 }
 0x1e3   : > { %955 = vst.msk [vmem:[%s1582_s25 + $0x88] sm:$0xff] %vm937_vm1, %v864_v34 }
 0x1e4   : > { %954 = vst.msk [vmem:[%s1582_s25 + $0x80] sm:$0xff] %vm937_vm1, %v859_v36  ;;  %v1272_v37 = vpop.f32.mrb[12].mxu1 }
 0x1e5   : > { %v874_v38 = vadd.f32 %v1272_v37, %v1575_v1  ;;  %v868_v39 = vpop.f32.mrb[13].mxu1 }
 0x1e6   : > { %v869_v40 = vadd.f32 %v1575_v1, %v868_v39 }
 0x1e7   : > { %957 = vst.msk [vmem:[%s1582_s25 + $0x98] sm:$0xff] %vm937_vm1, %v874_v38 }
 0x1e8   : > { %956 = vst.msk [vmem:[%s1582_s25 + $0x90] sm:$0xff] %vm937_vm1, %v869_v40  ;;  %v1275_v41 = vpop.f32.mrb[14].mxu1 }
 0x1e9   : > { %v884_v42 = vadd.f32 %v1275_v41, %v1575_v1  ;;  %v878_v43 = vpop.f32.mrb[15].mxu1 }
 0x1ea   : > { %v879_v44 = vadd.f32 %v1575_v1, %v878_v43 }
 0x1eb   : > { %959 = vst.msk [vmem:[%s1582_s25 + $0xa8] sm:$0xff] %vm937_vm1, %v884_v42 }
 0x1ec   : > { %958 = vst.msk [vmem:[%s1582_s25 + $0xa0] sm:$0xff] %vm937_vm1, %v879_v44  ;;  %v1278_v45 = vpop.f32.mrb[16].mxu1 }
 0x1ed   : > { %v894_v46 = vadd.f32 %v1278_v45, %v1575_v1  ;;  %v888_v47 = vpop.f32.mrb[17].mxu1 }
 0x1ee   : > { %v889_v48 = vadd.f32 %v1575_v1, %v888_v47 }
 0x1ef   : > { %961 = vst.msk [vmem:[%s1582_s25 + $0xb8] sm:$0xff] %vm937_vm1, %v894_v46 }
 0x1f0   : > { %960 = vst.msk [vmem:[%s1582_s25 + $0xb0] sm:$0xff] %vm937_vm1, %v889_v48  ;;  %v1281_v49 = vpop.f32.mrb[18].mxu1 }
 0x1f1   : > { %v904_v50 = vadd.f32 %v1281_v49, %v1575_v1  ;;  %v898_v51 = vpop.f32.mrb[19].mxu1 }
 0x1f2   : > { %v899_v52 = vadd.f32 %v1575_v1, %v898_v51 }
 0x1f3   : > { %963 = vst.msk [vmem:[%s1582_s25 + $0xc8] sm:$0xff] %vm937_vm1, %v904_v50 }
 0x1f4   : > { %962 = vst.msk [vmem:[%s1582_s25 + $0xc0] sm:$0xff] %vm937_vm1, %v899_v52  ;;  %v1284_v53 = vpop.f32.mrb[20].mxu1 }
 0x1f5   : > { %v914_v54 = vadd.f32 %v1284_v53, %v1575_v1  ;;  %v908_v55 = vpop.f32.mrb[21].mxu1 }
 0x1f6   : > { %v909_v56 = vadd.f32 %v1575_v1, %v908_v55 }
 0x1f7   : > { %965 = vst.msk [vmem:[%s1582_s25 + $0xd8] sm:$0xff] %vm937_vm1, %v914_v54 }
 0x1f8   : > { %964 = vst.msk [vmem:[%s1582_s25 + $0xd0] sm:$0xff] %vm937_vm1, %v909_v56  ;;  %v1287_v57 = vpop.f32.mrb[22].mxu1 }
 0x1f9   : > { %v924_v58 = vadd.f32 %v1287_v57, %v1575_v1  ;;  %v918_v59 = vpop.f32.mrb[23].mxu1 }
 0x1fa   : > { %v919_v60 = vadd.f32 %v1575_v1, %v918_v59 }
 0x1fb   : > { %967 = vst.msk [vmem:[%s1582_s25 + $0xe8] sm:$0xff] %vm937_vm1, %v924_v58 }
 0x1fc   : > { %966 = vst.msk [vmem:[%s1582_s25 + $0xe0] sm:$0xff] %vm937_vm1, %v919_v60  ;;  %v1290_v61 = vpop.f32.mrb[24].mxu1 }
 0x1fd   : > { %v934_v63 = vadd.f32 %v1290_v61, %v1575_v1  ;;  %v928_v0 = vpop.f32.mrb[25].mxu1 }
 0x1fe   : > { %v929_v62 = vadd.f32 %v1575_v1, %v928_v0 }
 0x1ff   : > { %969 = vst.msk [vmem:[%s1582_s25 + $0xf8] sm:$0xff] %vm937_vm1, %v934_v63 }
 0x200   : > { %968 = vst.msk [vmem:[%s1582_s25 + $0xf0] sm:$0xff] %vm937_vm1, %v929_v62 }
 0x201 PF: > { %s15_s18 = sadd.s32 1, %s1361_s18  }
 0x202   : > { %p12_p4 = scmp.ge.s32.totalorder %s15_s18, 4  }
 0x204   :  { %14 = sbr.rel (!%p12_p4) target bundleno = 1 (0x1), region = 70 }

</bundles_post_ra>
